<compile_context>
chip_gen: v6e
topology: v6e:2x2x1
jax: 0.10.0
libtpu: 0.0.40
codegen_flags: <defaults>
</compile_context>

<pallas_src>
import functools
import math

import jax
import jax.numpy as jnp
from jax.experimental import pallas as pl
from jax.experimental.pallas import tpu as pltpu


def _round_up(a, b):
    return ((a + b - 1) // b) * b


def net_kernel(x_ref, w1t_ref, w2r_ref, o_ref, *, l):
    """One batch tile of the fused Net forward.

    x_ref  : [TB, d_pad]    bf16  (zero-padded lanes)
    w1t_ref: [d_pad, m_pad] bf16  (fc1.weight^T, zero-padded, VMEM-resident)
    w2r_ref: [8, m_pad]     f32   (row 0 = sqrt(m) * fc2.weight, rows 1-7 zero)
    o_ref  : [1, TB]        f32   (lane-packed result row for this batch tile)
    """
    if l <= 1:
        # PyTorch loop runs 0 times: x goes straight into fc2 (requires d == m).
        h32 = x_ref[...].astype(jnp.float32)
    else:
        w1t = w1t_ref[...]               # bf16 weights on the MXU path
        hb = x_ref[...]                  # bf16 input fed directly to the MXU
        h32 = None
        for i in range(l - 1):           # static unroll (l is static)
            if i > 0:
                hb = h32.astype(jnp.bfloat16)
            # bf16 operands, f32 MXU accumulation; ReLU stays f32 on the VPU.
            h32 = jnp.maximum(
                jnp.dot(hb, w1t, preferred_element_type=jnp.float32), 0.0)

    # fc2 (output width 1, sqrt(m) folded into w2r): contract the m axis of
    # [8, m_pad] x [TB, m_pad] -> [8, TB]; row 0 is the real result and is
    # already in the lane-packed output layout (batch along lanes).
    out_rows = jax.lax.dot_general(
        w2r_ref[...], h32,
        dimension_numbers=(((1,), (1,)), ((), ())),
        preferred_element_type=jnp.float32)            # [8, TB]
    o_ref[...] = out_rows[0:1, :].astype(o_ref.dtype)  # lane-dense [1, TB]


def prepare_params(w1, w2):
    """One-time weight prep, hoisted out of the per-call hot path.

    w1: [m, d] (PyTorch fc1.weight); w2: [1, m] (PyTorch fc2.weight).
    Returns:
      w1t_pad: [d_pad, m_pad] bf16  (fc1.weight^T, zero-padded)
      w2r_pad: [8, m_pad]     f32   (row 0 = sqrt(m) * fc2.weight, rest zero)
    Note: w1 is stored in bf16 (f32 MXU accumulation).  For very large m where
    the bf16 operand error times the sqrt(m) scale matters, keep an f32 copy
    and extend the kernel with an f32 weight path.
    """
    m, d = w1.shape
    d_pad = _round_up(d, 128)
    m_pad = _round_up(m, 128)
    w1t = jnp.zeros((d_pad, m_pad), jnp.float32)
    w1t = w1t.at[:d, :m].set(jnp.transpose(w1).astype(jnp.float32))
    w2r = jnp.zeros((8, m_pad), jnp.float32)
    w2r = w2r.at[0:1, :m].set(math.sqrt(float(m)) * w2.astype(jnp.float32))
    return w1t.astype(jnp.bfloat16), w2r


@functools.partial(jax.jit, static_argnames=("m", "l", "tb"))
def net_forward(x, w1t_pad, w2r_pad, *, m, l, tb=None):
    """x: [B, d] float32. Returns sqrt(m) * fc2(relu(fc1(...))) of shape [B, 1]."""
    B, d = x.shape
    d_pad, m_pad = w1t_pad.shape
    if l != 2:
        # fc1 is re-applied to its own output (l > 2) or x is fed straight
        # into fc2 (l == 1); both require d == m exactly (zero padding must
        # not be allowed to hide a shape mismatch).
        assert d == m, "l != 2 requires d == m (as in the PyTorch module)"

    # ---- batch-tile selection (tb must be a multiple of 128: lane-dense out)
    if tb is None:
        tb = min(512, _round_up(B, 128))
        if B > 128 and _round_up(B, tb) == tb:
            # v7x megacore: make sure the "parallel" grid axis has >= 2 tiles.
            tb = _round_up((B + 1) // 2, 128)
    tb = max(128, _round_up(tb, 128))
    B_pad = _round_up(B, tb)
    nb = B_pad // tb

    # ---- input: single fused pad + cast (skipped entirely when aligned)
    xb = x.astype(jnp.bfloat16)
    if d != d_pad or B != B_pad:
        xb = jnp.pad(xb, ((0, B_pad - B), (0, d_pad - d)))

    # ---- explicit scoped-VMEM budget (weights single-buffered + pipelined x)
    w_bytes = d_pad * m_pad * 2 + 8 * m_pad * 4        # resident weights
    x_bytes = 2 * tb * d_pad * 2                       # double-buffered x tile
    o_bytes = 2 * tb * 4                               # double-buffered out row
    act_bytes = 2 * tb * m_pad * 4                     # live f32 activations
    need = w_bytes + x_bytes + o_bytes + act_bytes
    vmem_limit = min(max(int(need * 1.5) + (2 << 20), 16 << 20), 96 << 20)

    kernel = functools.partial(net_kernel, l=l)
    out_row = pl.pallas_call(
        kernel,
        out_shape=jax.ShapeDtypeStruct((1, B_pad), jnp.float32),
        grid=(nb,),
        in_specs=[
            # Pipelined batch tile.  If profiling shows the input DMA exposed
            # (per-step compute is tiny), deepen with pipeline_mode=pl.Buffered(3).
            pl.BlockSpec((tb, d_pad), lambda i: (i, 0)),
            # VMEM-resident weights: constant index_map, single-buffered.
            pl.BlockSpec((d_pad, m_pad), lambda i: (0, 0),
                         pipeline_mode=pl.Buffered(1)),
            pl.BlockSpec((8, m_pad), lambda i: (0, 0),
                         pipeline_mode=pl.Buffered(1)),
        ],
        # Lane-packed output: one (1, tb) f32 row per grid step.
        out_specs=pl.BlockSpec((1, tb), lambda i: (0, i)),
        compiler_params=pltpu.CompilerParams(
            dimension_semantics=("parallel",),
            vmem_limit_bytes=vmem_limit,
        ),
    )(xb, w1t_pad, w2r_pad)
    # TODO(synk): for very large m (single-buffered w1^T beyond ~24-28 MiB,
    # i.e. d==m around 3.5-4K bf16 on v7x's 64 MiB VMEM), switch to a K/N-tiled
    # weight grid with an f32 accumulator instead of whole-weight residency.
    return out_row[0, :B].reshape(B, 1)


def torch_like_linear_init(key, out_features, in_features):
    # nn.Linear default init: U(-1/sqrt(in_features), 1/sqrt(in_features))
    bound = 1.0 / math.sqrt(in_features)
    return jax.random.uniform(
        key, (out_features, in_features), jnp.float32, -bound, bound
    )


if __name__ == "__main__":
    # For l > 2 the PyTorch module feeds fc1's output back into fc1, which
    # requires d == m; pick d = m accordingly.  B=300 exercises a 2-tile grid
    # (tb auto-selected to 256) with the lane-packed output path.
    B, d, m, l = 300, 32, 32, 3

    key = jax.random.PRNGKey(0)
    kx, k1, k2 = jax.random.split(key, 3)

    x = jax.random.normal(kx, (B, d), jnp.float32)
    w1 = torch_like_linear_init(k1, m, d)    # fc1.weight  [m, d]
    w2 = torch_like_linear_init(k2, 1, m)    # fc2.weight  [1, m]

    # Weight transpose/pad/sqrt(m)-fold done once, outside the per-call path.
    w1t_pad, w2r_pad = prepare_params(w1, w2)

    out = net_forward(x, w1t_pad, w2r_pad, m=m, l=l)
    out = jax.block_until_ready(out)

    # Pure-JAX f32 reference.  bf16 MXU operands (with f32 accumulation)
    # loosen the tolerance vs a pure-f32 comparison.
    h = x
    for _ in range(l - 1):
        h = jnp.maximum(h @ w1.T, 0.0)
    ref = math.sqrt(m) * (h @ w2.T)

    assert out.shape == (B, 1)
    assert jnp.allclose(out, ref, atol=5e-2, rtol=5e-2), float(
        jnp.max(jnp.abs(out - ref))
    )
    print("KERNEL_OK")
</pallas_src>

<mosaic_0001>
module attributes {stable_mosaic.version = 11 : i64} {
  func.func @net_kernel(%arg0: i32, %arg1: memref<256x128xbf16, #tpu.memory_space<vmem>>, %arg2: memref<128x128xbf16, #tpu.memory_space<vmem>>, %arg3: memref<8x128xf32, #tpu.memory_space<vmem>>, %arg4: memref<1x256xf32, #tpu.memory_space<vmem>>) attributes {dimension_semantics = [#tpu.dimension_semantics<parallel>], iteration_bounds = array<i64: 2>, scalar_prefetch = 0 : i64, scratch_operands = 0 : i64, tpu.core_type = #tpu.core_type<tc>, window_params = [{transform_indices = @transform_0, window_bounds = array<i64: 256, 128>}, {pipeline_mode = #tpu.pipeline_mode<synchronous>, transform_indices = @transform_1, window_bounds = array<i64: 128, 128>}, {pipeline_mode = #tpu.pipeline_mode<synchronous>, transform_indices = @transform_2, window_bounds = array<i64: 8, 128>}, {transform_indices = @transform_3, window_bounds = array<i64: 1, 256>}]} {
    %c0 = arith.constant 0 : index
    %c0_0 = arith.constant 0 : index
    %0 = vector.load %arg2[%c0, %c0_0] : memref<128x128xbf16, #tpu.memory_space<vmem>>, vector<128x128xbf16>
    %c0_1 = arith.constant 0 : index
    %c0_2 = arith.constant 0 : index
    %1 = vector.load %arg1[%c0_1, %c0_2] : memref<256x128xbf16, #tpu.memory_space<vmem>>, vector<256x128xbf16>
    %cst = arith.constant dense<0.000000e+00> : vector<256x128xf32>
    %2 = tpu.matmul %1, %0, %cst {dimension_numbers = #tpu.dot_dimension_numbers<[1], [0], [0], [1], [0, 0, 1, 1], [], []>} : vector<256x128xbf16>, vector<128x128xbf16>, vector<256x128xf32> -> vector<256x128xf32>
    %cst_3 = arith.constant 0.000000e+00 : f32
    %3 = vector.broadcast %cst_3 : f32 to vector<256x128xf32>
    %4 = arith.maximumf %2, %3 : vector<256x128xf32>
    %5 = arith.truncf %4 : vector<256x128xf32> to vector<256x128xbf16>
    %cst_4 = arith.constant dense<0.000000e+00> : vector<256x128xf32>
    %6 = tpu.matmul %5, %0, %cst_4 {dimension_numbers = #tpu.dot_dimension_numbers<[1], [0], [0], [1], [0, 0, 1, 1], [], []>} : vector<256x128xbf16>, vector<128x128xbf16>, vector<256x128xf32> -> vector<256x128xf32>
    %cst_5 = arith.constant 0.000000e+00 : f32
    %7 = vector.broadcast %cst_5 : f32 to vector<256x128xf32>
    %8 = arith.maximumf %6, %7 : vector<256x128xf32>
    %c0_6 = arith.constant 0 : index
    %c0_7 = arith.constant 0 : index
    %9 = vector.load %arg3[%c0_6, %c0_7] : memref<8x128xf32, #tpu.memory_space<vmem>>, vector<8x128xf32>
    %cst_8 = arith.constant dense<0.000000e+00> : vector<8x256xf32>
    %10 = tpu.matmul %9, %8, %cst_8 {dimension_numbers = #tpu.dot_dimension_numbers<[1], [1], [0], [0], [0, 0, 1, 0], [], []>} : vector<8x128xf32>, vector<256x128xf32>, vector<8x256xf32> -> vector<8x256xf32>
    %11 = vector.extract_strided_slice %10 {offsets = [0, 0], sizes = [1, 256], strides = [1, 1]} : vector<8x256xf32> to vector<1x256xf32>
    %c0_9 = arith.constant 0 : index
    %c0_10 = arith.constant 0 : index
    %12 = vector.load %arg4[%c0_9, %c0_10] : memref<1x256xf32, #tpu.memory_space<vmem>>, vector<1x256xf32>
    tpu.vector_store %arg4[%c0_9, %c0_10], %11 {strides = array<i32>} : memref<1x256xf32, #tpu.memory_space<vmem>>, vector<1x256xf32>,
    return
  }
  func.func @transform_0(%arg0: i32) -> (i32, i32) {
    %c0_i32 = arith.constant 0 : i32
    %c0_i32_0 = arith.constant 0 : i32
    return %arg0, %c0_i32 : i32, i32
  }
  func.func @transform_1(%arg0: i32) -> (i32, i32) {
    %c0_i32 = arith.constant 0 : i32
    %c0_i32_0 = arith.constant 0 : i32
    %c0_i32_1 = arith.constant 0 : i32
    return %c0_i32, %c0_i32_0 : i32, i32
  }
  func.func @transform_2(%arg0: i32) -> (i32, i32) {
    %c0_i32 = arith.constant 0 : i32
    %c0_i32_0 = arith.constant 0 : i32
    %c0_i32_1 = arith.constant 0 : i32
    return %c0_i32, %c0_i32_0 : i32, i32
  }
  func.func @transform_3(%arg0: i32) -> (i32, i32) {
    %c0_i32 = arith.constant 0 : i32
    %c0_i32_0 = arith.constant 0 : i32
    return %c0_i32, %arg0 : i32, i32
  }
}

</mosaic_0001>

<bundles_post_ra>
// kernel: net_forward.1
= control target key start
LH: loop header
LB: loop body
LE: loop exit
PB: predicated region body
PF: predicated region fallthrough
CT: control target
= control target key end

     0   :  { %s1186_s12 = smov 0   ;;  %s1289_s0 = inlined_call_operand.vmem [shape: bf16[512,128], index: 0, kind: input, shape index: {}]   ;;  %s1290_s1 = inlined_call_operand.vmem [shape: bf16[128,128], index: 1, kind: input, shape index: {}]   ;;  %s1291_s2 = inlined_call_operand.vmem [shape: f32[8,128], index: 2, kind: input, shape index: {}]   ;;  %s1292_s3 = inlined_call_operand.vmem [shape: f32[1,512], index: 3, kind: output, shape index: {}]  }
   0x1 LB: > { %s912_s13 = sadd.s32 4294967295, %s1163_s12   ;;  %p916_p0 = scmp.ge.s32.totalorder %s1163_s12, 1  ;;  %s1163_s12 = sphi %s1186_s12, %s13_s12  }
   0x2   : > { %p138_p1 = scmp.lt.s32.totalorder %s1163_s12, 3 }
   0x4   : > { %p139_p2 = pnand %p916_p0, %p138_p1 }
   0x5   : > { %s917_s16 = sshll.u32 (!%p139_p2), %s912_s13, 5  ;;  %s919_s10 = sshll.u32 (!%p139_p2), %s912_s13, 1 }
   0x6   : > { %142 = sbr.rel (%p139_p2) target bundleno = 769 (0x301), region = 32  ;;  %p162_p3 = scmp.lt.s32.totalorder (!%p139_p2), %s917_s16, 63 }
   0x7   : > { %p168_p4 = scmp.lt.s32.totalorder (!%p139_p2), %s919_s10, 3 }
   0xb   : > { %v1133_v0 = vld [vmem:[%s1290_s1 + $0x38] sm:$0xff]   ;;  %v1134_v1 = vld [vmem:[%s1290_s1 + $0x30] sm:$0xff]   ;;  %s1294_s16 = smov (!%p162_p3, %s917_s16), 63  ;;  %v1135_v2 = vld [vmem:[%s1290_s1 + $0x28] sm:$0xff]   ;;  %s1296_s10 = smov (!%p168_p4, %s919_s10), 3 }
   0xc   : > { %1028 = vmatprep.subr.bf16.mxu0 %v1133_v0  ;;  %1076 = vmatprep.subr.bf16.mxu1 %v1133_v0  ;;  %s918_s21 = sshll.u32 %s1294_s16, 2  ;;  %v1136_v3 = vld [vmem:[%s1290_s1 + $0x20] sm:$0xff]   ;;  %v1137_v5 = vld [vmem:[%s1290_s1 + $0x18] sm:$0xff]   ;;  %v1138_v6 = vld [vmem:[%s1290_s1 + $0x10] sm:$0xff]   ;;  %s170_s15 = scalar_lea.vmem %s1292_s3, %s1296_s10 }
   0xd   : > { %1029 = vmatpush3.bf16.msra.mxu0 %v1133_v0  ;;  %1077 = vmatpush3.bf16.msra.mxu1 %v1133_v0  ;;  %s1208_s24 = scalar_lea.vmem %s1289_s0, %s918_s21  ;;  %v1139_v7 = vld [vmem:[%s1290_s1 + $0x8] sm:$0xff]   ;;  %v1140_v8 = vld [vmem:[%s1290_s1] sm:$0xff]  }
   0xe   : > { %1030 = vmatprep.subr.bf16.mxu0 %v1134_v1  ;;  %1078 = vmatprep.subr.bf16.mxu1 %v1134_v1  ;;  %v1141_v4 = vld [vmem:[%s1208_s24] sm:$0xff]   ;;  %v1142_v9 = vld [vmem:[%s1208_s24 + $0x8] sm:$0xff]   ;;  %v1143_v10 = vld [vmem:[%s1208_s24 + $0x10] sm:$0xff]  }
   0xf   : > { %1044 = vmatprep.mubr.bf16.mxu0 %v1141_v4  ;;  %v1144_v11 = vld [vmem:[%s1208_s24 + $0x18] sm:$0xff]   ;;  %v1145_v12 = vld [vmem:[%s1208_s24 + $0x20] sm:$0xff]   ;;  %v1146_v13 = vld [vmem:[%s1208_s24 + $0x28] sm:$0xff]  }
  0x10   : > { %v1147_v14 = vld [vmem:[%s1208_s24 + $0x30] sm:$0xff]   ;;  %v1148_v15 = vld [vmem:[%s1208_s24 + $0x38] sm:$0xff]   ;;  %v1149_v16 = vld [vmem:[%s1208_s24 + $0x40] sm:$0xff]  }
  0x11   : > { %1031 = vmatpush3.bf16.msra.mxu0 %v1134_v1  ;;  %1079 = vmatpush3.bf16.msra.mxu1 %v1134_v1  ;;  %v1150_v17 = vld [vmem:[%s1208_s24 + $0x48] sm:$0xff]   ;;  %v1151_v18 = vld [vmem:[%s1208_s24 + $0x50] sm:$0xff]   ;;  %v1152_v19 = vld [vmem:[%s1208_s24 + $0x58] sm:$0xff]  }
  0x12   : > { %1032 = vmatprep.subr.bf16.mxu0 %v1135_v2  ;;  %1080 = vmatprep.subr.bf16.mxu1 %v1135_v2  ;;  %v1153_v20 = vld [vmem:[%s1208_s24 + $0x60] sm:$0xff]   ;;  %v1154_v21 = vld [vmem:[%s1208_s24 + $0x68] sm:$0xff]   ;;  %v1155_v22 = vld [vmem:[%s1208_s24 + $0x70] sm:$0xff]  }
  0x13   : > { %v1156_v23 = vld [vmem:[%s1208_s24 + $0x78] sm:$0xff]  }
  0x15   : > { %1033 = vmatpush3.bf16.msra.mxu0 %v1135_v2  ;;  %1081 = vmatpush3.bf16.msra.mxu1 %v1135_v2 }
  0x16   : > { %1034 = vmatprep.subr.bf16.mxu0 %v1136_v3  ;;  %1082 = vmatprep.subr.bf16.mxu1 %v1136_v3 }
  0x19   : > { %1035 = vmatpush3.bf16.msra.mxu0 %v1136_v3  ;;  %1083 = vmatpush3.bf16.msra.mxu1 %v1136_v3 }
  0x1a   : > { %1036 = vmatprep.subr.bf16.mxu0 %v1137_v5  ;;  %1084 = vmatprep.subr.bf16.mxu1 %v1137_v5 }
  0x1d   : > { %1037 = vmatpush3.bf16.msra.mxu0 %v1137_v5  ;;  %1085 = vmatpush3.bf16.msra.mxu1 %v1137_v5 }
  0x1e   : > { %1038 = vmatprep.subr.bf16.mxu0 %v1138_v6  ;;  %1086 = vmatprep.subr.bf16.mxu1 %v1138_v6 }
  0x21   : > { %1039 = vmatpush3.bf16.msra.mxu0 %v1138_v6  ;;  %1087 = vmatpush3.bf16.msra.mxu1 %v1138_v6 }
  0x22   : > { %1040 = vmatprep.subr.bf16.mxu0 %v1139_v7  ;;  %1088 = vmatprep.subr.bf16.mxu1 %v1139_v7 }
  0x25   : > { %1041 = vmatpush3.bf16.msra.mxu0 %v1139_v7  ;;  %1089 = vmatpush3.bf16.msra.mxu1 %v1139_v7 }
  0x26   : > { %1042 = vmatprep.subr.bf16.mxu0 %v1140_v8  ;;  %1090 = vmatprep.subr.bf16.mxu1 %v1140_v8 }
  0x29   : > { %1043 = vmatpush3.bf16.msra.mxu0 %v1140_v8  ;;  %1091 = vmatpush3.bf16.msra.mxu1 %v1140_v8 }
  0x2c   : > { %1045 = vmatmul.mubr.bf16.vlgmr.msra.gmra.mxu0 %v1142_v9 }
  0x2d   : > { %1048 = vmatprep.mubr.bf16.mxu0 %v1143_v10 }
  0x34   : > { %1049 = vmatmul.mubr.bf16.gmra.mxu0 %v1144_v11 }
  0x35   : > { %1052 = vmatprep.mubr.bf16.mxu0 %v1145_v12 }
  0x3c   : > { %1053 = vmatmul.mubr.bf16.gmra.mxu0 %v1146_v13 }
  0x3d   : > { %1056 = vmatprep.mubr.bf16.mxu0 %v1147_v14 }
  0x44   : > { %1057 = vmatmul.mubr.bf16.gmra.mxu0 %v1148_v15 }
  0x45   : > { %1060 = vmatprep.mubr.bf16.mxu0 %v1149_v16 }
  0x4c   : > { %1061 = vmatmul.mubr.bf16.gmra.mxu0 %v1150_v17 }
  0x4d   : > { %1064 = vmatprep.mubr.bf16.mxu0 %v1151_v18 }
  0x54   : > { %1065 = vmatmul.mubr.bf16.gmra.mxu0 %v1152_v19 }
  0x55   : > { %1068 = vmatprep.mubr.bf16.mxu0 %v1153_v20 }
  0x5c   : > { %1069 = vmatmul.mubr.bf16.gmra.mxu0 %v1154_v21 }
  0x5d   : > { %1072 = vmatprep.mubr.bf16.mxu0 %v1155_v22 }
  0x64   : > { %1073 = vmatmul.mubr.bf16.gmra.mxu0 %v1156_v23 }
  0xec   : > { %v1046_v24 = vpop.f32.mrf.mxu0 }
  0xed   : > { %v528_v31 = vmax.f32 %v1046_v24, 0.0 }
  0xee   : > { %v399_v25 = vpop.f32.mrf.mxu0 }
  0xef   : > { %v526_v29 = vmax.f32 %v399_v25, 0.0 }
  0xf0   : > { %v1047_v26 = vpop.f32.mrf.mxu0 }
  0xf1   : > { %v529_v27 = vmax.f32 %v1047_v26, 0.0 }
  0xf2   : > { %v402_v28 = vpop.f32.mrf.mxu0 }
  0xf3   : > { %v527_v30 = vmax.f32 %v402_v28, 0.0  ;;  %v559_v34 = vpack.c.bf16 %v529_v27, %v528_v31 }
  0xf4   : > { %v1050_v32 = vpop.f32.mrf.mxu0 }
  0xf5   : > { %v558_v33 = vpack.c.bf16 %v527_v30, %v526_v29  ;;  %v532_v41 = vmax.f32 %v1050_v32, 0.0 }
  0xf6   : > { %v415_v35 = vpop.f32.mrf.mxu0 }
  0xf7   : > { %1092 = vmatprep.mubr.bf16.mxu1 %v558_v33  ;;  %v530_v39 = vmax.f32 %v415_v35, 0.0 }
  0xf8   : > { %v1051_v36 = vpop.f32.mrf.mxu0  ;;  %1093 = vmatmul.mubr.bf16.vlgmr.msra.gmra.mxu1 %v559_v34 }
  0xf9   : > { %v533_v37 = vmax.f32 %v1051_v36, 0.0 }
  0xfa   : > { %v418_v38 = vpop.f32.mrf.mxu0 }
  0xfb   : > { %v531_v40 = vmax.f32 %v418_v38, 0.0  ;;  %v561_v44 = vpack.c.bf16 %v533_v37, %v532_v41 }
  0xfc   : > { %v1054_v42 = vpop.f32.mrf.mxu0 }
  0xfd   : > { %v560_v43 = vpack.c.bf16 %v531_v40, %v530_v39  ;;  %v536_v51 = vmax.f32 %v1054_v42, 0.0  ;;  %v1244_v40 = vld [vmem:[%s1291_s2] sm:$0xff] }
  0xfe   : > { %v431_v45 = vpop.f32.mrf.mxu0  ;;  %1026 = vmatprep.mubr.f32.mxu0 %v1244_v40 }
  0xff   : > { %1096 = vmatprep.mubr.bf16.mxu1 %v560_v43  ;;  %v534_v49 = vmax.f32 %v431_v45, 0.0 }
 0x100   : > { %v1055_v46 = vpop.f32.mrf.mxu0  ;;  %1097 = vmatmul.mubr.bf16.gmra.mxu1 %v561_v44 }
 0x101   : > { %v537_v47 = vmax.f32 %v1055_v46, 0.0 }
 0x102   : > { %v434_v48 = vpop.f32.mrf.mxu0 }
 0x103   : > { %v535_v50 = vmax.f32 %v434_v48, 0.0  ;;  %v563_v54 = vpack.c.bf16 %v537_v47, %v536_v51 }
 0x104   : > { %v1058_v52 = vpop.f32.mrf.mxu0 }
 0x105   : > { %v562_v53 = vpack.c.bf16 %v535_v50, %v534_v49  ;;  %v540_v61 = vmax.f32 %v1058_v52, 0.0 }
 0x106   : > { %v447_v55 = vpop.f32.mrf.mxu0 }
 0x107   : > { %1100 = vmatprep.mubr.bf16.mxu1 %v562_v53  ;;  %v538_v59 = vmax.f32 %v447_v55, 0.0 }
 0x108   : > { %v1059_v56 = vpop.f32.mrf.mxu0  ;;  %1101 = vmatmul.mubr.bf16.gmra.mxu1 %v563_v54 }
 0x109   : > { %v541_v57 = vmax.f32 %v1059_v56, 0.0 }
 0x10a   : > { %v450_v58 = vpop.f32.mrf.mxu0 }
 0x10b   : > { %v539_v60 = vmax.f32 %v450_v58, 0.0  ;;  %v565_v0 = vpack.c.bf16 %v541_v57, %v540_v61 }
 0x10c   : > { %v1062_v62 = vpop.f32.mrf.mxu0 }
 0x10d   : > { %v564_v63 = vpack.c.bf16 %v539_v60, %v538_v59  ;;  %v544_v7 = vmax.f32 %v1062_v62, 0.0 }
 0x10e   : > { %v463_v1 = vpop.f32.mrf.mxu0 }
 0x10f   : > { %1104 = vmatprep.mubr.bf16.mxu1 %v564_v63  ;;  %v542_v5 = vmax.f32 %v463_v1, 0.0 }
 0x110   : > { %v1063_v2 = vpop.f32.mrf.mxu0  ;;  %1105 = vmatmul.mubr.bf16.gmra.mxu1 %v565_v0 }
 0x111   : > { %v545_v3 = vmax.f32 %v1063_v2, 0.0 }
 0x112   : > { %v466_v4 = vpop.f32.mrf.mxu0 }
 0x113   : > { %v543_v6 = vmax.f32 %v466_v4, 0.0  ;;  %v567_v10 = vpack.c.bf16 %v545_v3, %v544_v7 }
 0x114   : > { %v1066_v8 = vpop.f32.mrf.mxu0 }
 0x115   : > { %v566_v9 = vpack.c.bf16 %v543_v6, %v542_v5  ;;  %v548_v17 = vmax.f32 %v1066_v8, 0.0 }
 0x116   : > { %v479_v11 = vpop.f32.mrf.mxu0 }
 0x117   : > { %1108 = vmatprep.mubr.bf16.mxu1 %v566_v9  ;;  %v546_v15 = vmax.f32 %v479_v11, 0.0 }
 0x118   : > { %v1067_v12 = vpop.f32.mrf.mxu0  ;;  %1109 = vmatmul.mubr.bf16.gmra.mxu1 %v567_v10 }
 0x119   : > { %v549_v13 = vmax.f32 %v1067_v12, 0.0 }
 0x11a   : > { %v482_v14 = vpop.f32.mrf.mxu0 }
 0x11b   : > { %v547_v16 = vmax.f32 %v482_v14, 0.0  ;;  %v569_v20 = vpack.c.bf16 %v549_v13, %v548_v17 }
 0x11c   : > { %v1070_v18 = vpop.f32.mrf.mxu0 }
 0x11d   : > { %v568_v19 = vpack.c.bf16 %v547_v16, %v546_v15  ;;  %v552_v27 = vmax.f32 %v1070_v18, 0.0 }
 0x11e   : > { %v495_v21 = vpop.f32.mrf.mxu0 }
 0x11f   : > { %1112 = vmatprep.mubr.bf16.mxu1 %v568_v19  ;;  %v550_v25 = vmax.f32 %v495_v21, 0.0 }
 0x120   : > { %v1071_v22 = vpop.f32.mrf.mxu0  ;;  %1113 = vmatmul.mubr.bf16.gmra.mxu1 %v569_v20 }
 0x121   : > { %v553_v23 = vmax.f32 %v1071_v22, 0.0 }
 0x122   : > { %v498_v24 = vpop.f32.mrf.mxu0 }
 0x123   : > { %v551_v26 = vmax.f32 %v498_v24, 0.0  ;;  %v571_v30 = vpack.c.bf16 %v553_v23, %v552_v27 }
 0x124   : > { %v1074_v28 = vpop.f32.mrf.mxu0 }
 0x125   : > { %v570_v29 = vpack.c.bf16 %v551_v26, %v550_v25  ;;  %v556_v37 = vmax.f32 %v1074_v28, 0.0 }
 0x126   : > { %v511_v31 = vpop.f32.mrf.mxu0 }
 0x127   : > { %1116 = vmatprep.mubr.bf16.mxu1 %v570_v29  ;;  %v554_v35 = vmax.f32 %v511_v31, 0.0 }
 0x128   : > { %v1075_v32 = vpop.f32.mrf.mxu0  ;;  %1117 = vmatmul.mubr.bf16.gmra.mxu1 %v571_v30 }
 0x129   : > { %v557_v33 = vmax.f32 %v1075_v32, 0.0 }
 0x12a   : > { %v514_v34 = vpop.f32.mrf.mxu0 }
 0x12b   : > { %v555_v36 = vmax.f32 %v514_v34, 0.0  ;;  %v573_v39 = vpack.c.bf16 %v557_v33, %v556_v37 }
 0x12d   : > { %v572_v38 = vpack.c.bf16 %v555_v36, %v554_v35 }
 0x12f   : > { %1120 = vmatprep.mubr.bf16.mxu1 %v572_v38 }
 0x130   : > { %1121 = vmatmul.mubr.bf16.gmra.mxu1 %v573_v39 }
 0x1b8   : > { %v1247_v41 = vpop.f32.mrf.mxu1 }
 0x1b9   : > { %v737_v36 = vmax.f32 %v1247_v41, 0.0 }
 0x1ba   : > { %v1249_v42 = vpop.f32.mrf.mxu1 }
 0x1bc   : > { %v1251_v43 = vpop.f32.mrf.mxu1 }
 0x1bd   : > { %v738_v34 = vmax.f32 %v1251_v43, 0.0  ;;  %v1165_v43 = vmov 1966171168  }
 0x1be   : > { %v1253_v44 = vpop.f32.mrf.mxu1 }
 0x1bf   : > { %v736_v38 = vmax.f32 %v1253_v44, 0.0 }
 0x1c0   : > { %v1255_v45 = vpop.f32.mrf.mxu1 }
 0x1c1   : > { %v741_v28 = vmax.f32 %v1255_v45, 0.0  ;;  %v735_v45 = vmax.f32 %v1249_v42, 0.0 }
 0x1c2   : > { %v1257_v46 = vpop.f32.mrf.mxu1 }
 0x1c3   : > { %v739_v32 = vmax.f32 %v1257_v46, 0.0  ;;  %v843_v46 = vunpack.c.l.s4 %v1165_v43 }
 0x1c4   : > { %v1099_v47 = vpop.f32.mrf.mxu1 }
 0x1c5   : > { %v742_v26 = vmax.f32 %v1099_v47, 0.0  ;;  %v845_v47 = vlaneseq  ;;  %v844_v41 = vunpack.c.0.s8 %v843_v46 }
 0x1c6   : > { %v1259_v48 = vpop.f32.mrf.mxu1 }
 0x1c7   : > { %v740_v30 = vmax.f32 %v1259_v48, 0.0  ;;  %v846_v48 = vshrl.u32 %v845_v47, 7  ;;  %vm859_vm0 = vcmp.lt.s32.totalorder %v845_v47, 256 }
 0x1c8   : > { %v1102_v49 = vpop.f32.mrf.mxu1 }
 0x1c9   : > { %v745_v20 = vmax.f32 %v1102_v49, 0.0 }
 0x1ca   : > { %v640_v50 = vpop.f32.mrf.mxu1 }
 0x1cb   : > { %v743_v24 = vmax.f32 %v640_v50, 0.0  ;;  %v847_v50 = vsub.s32 %v844_v41, %v846_v48 }
 0x1cc   : > { %v1103_v51 = vpop.f32.mrf.mxu1 }
 0x1cd   : > { %v746_v18 = vmax.f32 %v1103_v51, 0.0 }
 0x1ce   : > { %v643_v52 = vpop.f32.mrf.mxu1 }
 0x1cf   : > { %v744_v22 = vmax.f32 %v643_v52, 0.0 }
 0x1d0   : > { %v1106_v53 = vpop.f32.mrf.mxu1 }
 0x1d1   : > { %v749_v12 = vmax.f32 %v1106_v53, 0.0 }
 0x1d2   : > { %v656_v54 = vpop.f32.mrf.mxu1 }
 0x1d3   : > { %v747_v16 = vmax.f32 %v656_v54, 0.0 }
 0x1d4   : > { %v1107_v55 = vpop.f32.mrf.mxu1 }
 0x1d5   : > { %v750_v9 = vmax.f32 %v1107_v55, 0.0 }
 0x1d6   : > { %v659_v56 = vpop.f32.mrf.mxu1 }
 0x1d7   : > { %v748_v14 = vmax.f32 %v659_v56, 0.0 }
 0x1d8   : > { %v1261_v57 = vpop.f32.mrf.mxu1 }
 0x1d9   : > { %v753_v35 = vmax.f32 %v1261_v57, 0.0 }
 0x1da   : > { %v1263_v58 = vpop.f32.mrf.mxu1 }
 0x1db   : > { %v751_v39 = vmax.f32 %v1263_v58, 0.0 }
 0x1dc   : > { %v1265_v59 = vpop.f32.mrf.mxu1 }
 0x1dd   : > { %v754_v33 = vmax.f32 %v1265_v59, 0.0 }
 0x1de   : > { %v1267_v60 = vpop.f32.mrf.mxu1 }
 0x1df   : > { %v752_v37 = vmax.f32 %v1267_v60, 0.0 }
 0x1e0   : > { %v1114_v61 = vpop.f32.mrf.mxu1 }
 0x1e1   : > { %v757_v27 = vmax.f32 %v1114_v61, 0.0 }
 0x1e2   : > { %v688_v62 = vpop.f32.mrf.mxu1 }
 0x1e3   : > { %v755_v31 = vmax.f32 %v688_v62, 0.0 }
 0x1e4   : > { %v1115_v63 = vpop.f32.mrf.mxu1 }
 0x1e5   : > { %v758_v25 = vmax.f32 %v1115_v63, 0.0 }
 0x1e6   : > { %v691_v0 = vpop.f32.mrf.mxu1 }
 0x1e7   : > { %v756_v29 = vmax.f32 %v691_v0, 0.0 }
 0x1e8   : > { %v1118_v1 = vpop.f32.mrf.mxu1 }
 0x1e9   : > { %v761_v19 = vmax.f32 %v1118_v1, 0.0 }
 0x1ea   : > { %v704_v2 = vpop.f32.mrf.mxu1 }
 0x1eb   : > { %v759_v23 = vmax.f32 %v704_v2, 0.0 }
 0x1ec   : > { %v1119_v3 = vpop.f32.mrf.mxu1 }
 0x1ed   : > { %v762_v17 = vmax.f32 %v1119_v3, 0.0 }
 0x1ee   : > { %v707_v4 = vpop.f32.mrf.mxu1 }
 0x1ef   : > { %v760_v21 = vmax.f32 %v707_v4, 0.0 }
 0x1f0   : > { %v1122_v5 = vpop.f32.mrf.mxu1 }
 0x1f1   : > { %v765_v10 = vmax.f32 %v1122_v5, 0.0 }
 0x1f2   : > { %v720_v6 = vpop.f32.mrf.mxu1 }
 0x1f3   : > { %v763_v15 = vmax.f32 %v720_v6, 0.0 }
 0x1f4   : > { %v1123_v7 = vpop.f32.mrf.mxu1 }
 0x1f5   : > { %v766_v8 = vmax.f32 %v1123_v7, 0.0 }
 0x1f6   : > { %v723_v11 = vpop.f32.mrf.mxu1 }
 0x1f7   : > { %994 = vmatprep.subr.mxu0 %v766_v8  ;;  %v764_v13 = vmax.f32 %v723_v11, 0.0 }
 0x1f8   : > { %995 = vmatpush3.xpose.msra.mxu0 %v750_v9 }
 0x1f9   : > { %996 = vmatprep.subr.mxu0 %v765_v10 }
 0x1fc   : > { %997 = vmatpush3.xpose.msra.mxu0 %v749_v12 }
 0x1fd   : > { %998 = vmatprep.subr.mxu0 %v764_v13 }
 0x200   : > { %999 = vmatpush3.xpose.msra.mxu0 %v748_v14 }
 0x201   : > { %1000 = vmatprep.subr.mxu0 %v763_v15 }
 0x204   : > { %1001 = vmatpush3.xpose.msra.mxu0 %v747_v16 }
 0x205   : > { %1002 = vmatprep.subr.mxu0 %v762_v17 }
 0x208   : > { %1003 = vmatpush3.xpose.msra.mxu0 %v746_v18 }
 0x209   : > { %1004 = vmatprep.subr.mxu0 %v761_v19 }
 0x20c   : > { %1005 = vmatpush3.xpose.msra.mxu0 %v745_v20 }
 0x20d   : > { %1006 = vmatprep.subr.mxu0 %v760_v21 }
 0x210   : > { %1007 = vmatpush3.xpose.msra.mxu0 %v744_v22 }
 0x211   : > { %1008 = vmatprep.subr.mxu0 %v759_v23 }
 0x214   : > { %1009 = vmatpush3.xpose.msra.mxu0 %v743_v24 }
 0x215   : > { %1010 = vmatprep.subr.mxu0 %v758_v25 }
 0x218   : > { %1011 = vmatpush3.xpose.msra.mxu0 %v742_v26 }
 0x219   : > { %1012 = vmatprep.subr.mxu0 %v757_v27 }
 0x21c   : > { %1013 = vmatpush3.xpose.msra.mxu0 %v741_v28 }
 0x21d   : > { %1014 = vmatprep.subr.mxu0 %v756_v29 }
 0x220   : > { %1015 = vmatpush3.xpose.msra.mxu0 %v740_v30 }
 0x221   : > { %1016 = vmatprep.subr.mxu0 %v755_v31 }
 0x224   : > { %1017 = vmatpush3.xpose.msra.mxu0 %v739_v32 }
 0x225   : > { %1018 = vmatprep.subr.mxu0 %v754_v33 }
 0x228   : > { %1019 = vmatpush3.xpose.msra.mxu0 %v738_v34 }
 0x229   : > { %1020 = vmatprep.subr.mxu0 %v753_v35 }
 0x22c   : > { %1021 = vmatpush3.xpose.msra.mxu0 %v737_v36 }
 0x22d   : > { %1022 = vmatprep.subr.mxu0 %v752_v37 }
 0x230   : > { %1023 = vmatpush3.xpose.msra.mxu0 %v736_v38 }
 0x231   : > { %1024 = vmatprep.subr.mxu0 %v751_v39 }
 0x234   : > { %1025 = vmatpush3.xpose.msra.mxu0 %v735_v45 }
 0x237   : > { %1027 = vmatmul.mubr.f32.vlgmr.msra.gmra.mxu0 %v1244_v40 }
 0x2f7   : > { %v834_v49 = vpop.f32.mrf.mxu0 }
 0x2f9   : > { %v836_v44 = vpop.f32.mrf.mxu0 }
 0x2fa   : > { %v841_v51 = vcombine.low %v834_v49, %v836_v44 }
 0x2fc   : > { %v848_v52 = vrot.slane %v841_v51, %v847_v50 }
 0x2fe   : > { %v855_v40 = vrot.slane %v848_v52, %v847_v50 }
 0x300   : > { %861 = vst.msk [vmem:[%s170_s15] sm:$0x3] %vm859_vm0, %v855_v40 }
 0x301 PF: > { %s13_s12 = sadd.s32 1, %s1163_s12  }
 0x302   : > { %p10_p5 = scmp.ge.s32.totalorder %s13_s12, 4  }
 0x304   :  { %12 = sbr.rel (!%p10_p5) target bundleno = 1 (0x1), region = 62 }

</bundles_post_ra>
